<compile_context>
chip_gen: v7x
topology: tpu7x:2x2x1
jax: 0.10.0
libtpu: 0.0.40
codegen_flags: <defaults>
</compile_context>

<pallas_src>
import functools

import jax
import jax.numpy as jnp
from jax.experimental import pallas as pl
from jax.experimental.pallas import tpu as pltpu

LANE = 128               # lane width of a vreg
SUBLANE = 8              # f32 sublanes per vreg
SMALL_BATCH_ROWS = 512   # <= this many rows: single fused call, no grid
TB_CAP = 1024            # batch-tile cap for the grid path (multiple of 8)


def _round_up(n, m):
    return ((n + m - 1) // m) * m


# ----------------------------------------------------------------------------
# Fused Pallas kernel: full MLP, activations never leave on-chip memory.
# refs layout: x_ref, w_in, b_in, (w_h, b_h)*, w_out, b_out, out_ref
# ----------------------------------------------------------------------------
def _fused_mlp_kernel(x_ref, *refs, residual_flags):
    out_ref = refs[-1]
    p = refs[:-1]

    def dense(z, w_ref, b_ref):
        w = w_ref[...]
        if z.dtype != w.dtype:
            z = z.astype(w.dtype)  # bf16 matmul inputs when weights are bf16
        return jnp.dot(z, w, preferred_element_type=jnp.float32) + b_ref[...]

    z = x_ref[...].astype(jnp.float32)
    # fin + relu
    z = jnp.maximum(dense(z, p[0], p[1]), 0.0)
    # hidden layers: sigmoid (+ residual when ORIGINAL in_dim == out_dim)
    i = 2
    for res in residual_flags:
        h = jax.nn.sigmoid(dense(z, p[i], p[i + 1]))
        z = h + z if res else h
        i += 2
    # fout (no activation); output dim is NOT padded -> narrow store
    out_ref[...] = dense(z, p[i], p[i + 1]).astype(out_ref.dtype)


# ----------------------------------------------------------------------------
# One-time parameter preparation (padding + optional bf16 cast).  Cache this.
# ----------------------------------------------------------------------------
def prepare_params(params, *, compute_dtype=jnp.float32):
    """Pads/casts weights once so the per-call wrapper does zero weight work.

    Correctness note (do NOT change casually): padded hidden lanes hold
    sigmoid(0)=0.5 (accumulating across residual layers).  This never leaks
    into real lanes only because every padded weight ROW below is zero.
    """
    (w_in, b_in) = params["fin"]
    hidden = params["hidden"]
    (w_out, b_out) = params["fout"]

    input_dim = w_in.shape[0]
    ndof = w_out.shape[1]
    # residual iff ORIGINAL in_dim == out_dim (decided pre-padding)
    residual_flags = tuple(w.shape[0] == w.shape[1] for (w, _) in hidden)

    din_pad = _round_up(input_dim, SUBLANE)  # feature dim of x: 8-pad only

    def pad_wb(w, b, rows_p, cols_p):
        wp = jnp.zeros((rows_p, cols_p), jnp.float32)
        wp = wp.at[: w.shape[0], : w.shape[1]].set(w)
        bp = jnp.zeros((1, cols_p), jnp.float32).at[0, : b.shape[0]].set(b)
        return wp.astype(compute_dtype), bp  # bias stays f32 (f32 accumulate)

    flat = []
    cols = _round_up(w_in.shape[1], LANE)
    flat += pad_wb(w_in, b_in, din_pad, cols)
    prev_cols = cols
    for (w, b) in hidden:
        cols = _round_up(w.shape[1], LANE)
        flat += pad_wb(w, b, prev_cols, cols)
        prev_cols = cols
    flat += pad_wb(w_out, b_out, prev_cols, ndof)  # ndof NOT padded

    return {
        "flat": tuple(flat),
        "residual_flags": residual_flags,
        "input_dim": input_dim,
        "din_pad": din_pad,
        "ndof": ndof,
    }


# ----------------------------------------------------------------------------
# Forward wrapper.
# ----------------------------------------------------------------------------
def residual_beam_approximator(prepared, x):
    """prepared: output of prepare_params; x: (B, input_dim) f32."""
    B, in_dim = x.shape
    assert in_dim == prepared["input_dim"]
    flat = prepared["flat"]
    din_pad = prepared["din_pad"]
    ndof = prepared["ndof"]

    kernel = functools.partial(
        _fused_mlp_kernel, residual_flags=prepared["residual_flags"]
    )

    # Feature pad only to a sublane multiple (usually a no-op) — never to 128.
    if in_dim != din_pad:
        x = jnp.pad(x, ((0, 0), (0, din_pad - in_dim)))

    Bp8 = _round_up(B, SUBLANE)
    if Bp8 <= SMALL_BATCH_ROWS:
        # Small batch: everything explicitly resident in VMEM, no grid/pipeline.
        vmem = pl.BlockSpec(memory_space=pltpu.MemorySpace.VMEM)
        return pl.pallas_call(
            kernel,
            out_shape=jax.ShapeDtypeStruct((B, ndof), jnp.float32),
            in_specs=[vmem] * (1 + len(flat)),
            out_specs=vmem,
        )(x, *flat)

    # Large batch: tile the batch axis.  >=2 tiles so the "parallel" axis feeds
    # both v7x TensorCores; tiles up to 1024 rows for ~85% of HBM roofline.
    TB = min(TB_CAP, _round_up(pl.cdiv(Bp8, 2), SUBLANE))
    Bp = _round_up(B, TB)
    if Bp != B:
        x = jnp.pad(x, ((0, Bp - B), (0, 0)))
    n_tiles = Bp // TB

    # Weights/biases: full-array blocks with constant index_map -> fetched once.
    in_specs = [pl.BlockSpec((TB, din_pad), lambda i: (i, 0))]
    in_specs += [pl.BlockSpec(a.shape, lambda i: (0, 0)) for a in flat]
    out_specs = pl.BlockSpec((TB, ndof), lambda i: (i, 0))

    # Advisory cost estimate: tells XLA this custom call is cheap / mem-bound.
    weights = flat[0::2]
    flops = 2 * Bp * sum(w.shape[0] * w.shape[1] for w in weights)
    transcendentals = Bp * sum(w.shape[1] for w in weights[1:-1])  # sigmoids
    bytes_accessed = (
        x.size * x.dtype.itemsize
        + sum(a.size * a.dtype.itemsize for a in flat)
        + Bp * ndof * 4
    )

    out_p = pl.pallas_call(
        kernel,
        out_shape=jax.ShapeDtypeStruct((Bp, ndof), jnp.float32),
        grid=(n_tiles,),
        in_specs=in_specs,
        out_specs=out_specs,
        compiler_params=pltpu.CompilerParams(dimension_semantics=("parallel",)),
        cost_estimate=pl.CostEstimate(
            flops=flops,
            transcendentals=transcendentals,
            bytes_accessed=bytes_accessed,
        ),
    )(x, *flat)
    return out_p[:B]


# ----------------------------------------------------------------------------
# Parameter init mimicking nn.Linear's U(-1/sqrt(fan_in), 1/sqrt(fan_in)).
# Weights stored as (in_features, out_features).
# ----------------------------------------------------------------------------
def init_params(key, input_dim, layers, ndof):
    def make_linear(k, din, dout):
        kw, kb = jax.random.split(k)
        bound = 1.0 / jnp.sqrt(jnp.float32(din))
        w = jax.random.uniform(kw, (din, dout), jnp.float32, -bound, bound)
        b = jax.random.uniform(kb, (dout,), jnp.float32, -bound, bound)
        return w, b

    keys = jax.random.split(key, len(layers) + 2)
    return {
        "fin": make_linear(keys[0], input_dim, layers[0]),
        "hidden": [
            make_linear(keys[1 + i], layers[i], layers[i + 1])
            for i in range(len(layers) - 1)
        ],
        "fout": make_linear(keys[-1], layers[-1], ndof),
    }


# Pure-JAX reference for verification.
def reference_forward(params, x):
    w, b = params["fin"]
    z = jax.nn.relu(x @ w + b)
    for (w, b) in params["hidden"]:
        z_res = z
        z = jax.nn.sigmoid(z @ w + b)
        if z.shape == z_res.shape:
            z = z + z_res
    w, b = params["fout"]
    return z @ w + b


if __name__ == "__main__":
    key = jax.random.PRNGKey(0)
    k_param, k_x, k_x2 = jax.random.split(key, 3)

    input_dim = 16
    layers = [32, 32, 64]  # middle pair (32 -> 32) triggers the residual branch
    ndof = 8
    batch = 8

    params = init_params(k_param, input_dim, layers, ndof)
    prepared = prepare_params(params)  # one-time padding, f32 weights

    x = jax.random.normal(k_x, (batch, input_dim), jnp.float32)

    # Small-batch path (single fused call, all operands pinned to VMEM).
    out = jax.block_until_ready(residual_beam_approximator(prepared, x))
    ref = jax.block_until_ready(reference_forward(params, x))
    assert out.shape == (batch, ndof)
    assert jnp.allclose(out, ref, atol=1e-5, rtol=1e-5), "mismatch (small batch)"

    # Large-batch path (batch-tiled parallel grid, >= 2 tiles).
    big_batch = 2048
    xb = jax.random.normal(k_x2, (big_batch, input_dim), jnp.float32)
    out_b = jax.block_until_ready(residual_beam_approximator(prepared, xb))
    ref_b = jax.block_until_ready(reference_forward(params, xb))
    assert out_b.shape == (big_batch, ndof)
    assert jnp.allclose(out_b, ref_b, atol=1e-5, rtol=1e-5), "mismatch (big batch)"

    # Optional bf16 weight path (v6e/v7x MXU-friendly): weights pre-cast in HBM,
    # f32 accumulation; verified with a loose tolerance appropriate for bf16.
    prepared_bf16 = prepare_params(params, compute_dtype=jnp.bfloat16)
    out_bf = jax.block_until_ready(residual_beam_approximator(prepared_bf16, xb))
    assert out_bf.shape == (big_batch, ndof)
    assert jnp.allclose(out_bf, ref_b, atol=1e-1, rtol=1e-1), "mismatch (bf16)"

    print("KERNEL_OK")
</pallas_src>

<mosaic_0001>
module attributes {stable_mosaic.version = 11 : i64} {
  func.func @_fused_mlp_kernel(%arg0: memref<8x16xf32, #tpu.memory_space<vmem>>, %arg1: memref<16x128xf32, #tpu.memory_space<vmem>>, %arg2: memref<1x128xf32, #tpu.memory_space<vmem>>, %arg3: memref<128x128xf32, #tpu.memory_space<vmem>>, %arg4: memref<1x128xf32, #tpu.memory_space<vmem>>, %arg5: memref<128x128xf32, #tpu.memory_space<vmem>>, %arg6: memref<1x128xf32, #tpu.memory_space<vmem>>, %arg7: memref<128x8xf32, #tpu.memory_space<vmem>>, %arg8: memref<1x8xf32, #tpu.memory_space<vmem>>, %arg9: memref<8x8xf32, #tpu.memory_space<vmem>>) attributes {dimension_semantics = [], scalar_prefetch = 0 : i64, scratch_operands = 0 : i64, tpu.core_type = #tpu.core_type<tc>} {
    %c0 = arith.constant 0 : index
    %c0_0 = arith.constant 0 : index
    %0 = vector.load %arg0[%c0, %c0_0] : memref<8x16xf32, #tpu.memory_space<vmem>>, vector<8x16xf32>
    %c0_1 = arith.constant 0 : index
    %c0_2 = arith.constant 0 : index
    %1 = vector.load %arg1[%c0_1, %c0_2] : memref<16x128xf32, #tpu.memory_space<vmem>>, vector<16x128xf32>
    %cst = arith.constant dense<0.000000e+00> : vector<8x128xf32>
    %2 = tpu.matmul %0, %1, %cst {dimension_numbers = #tpu.dot_dimension_numbers<[1], [0], [0], [1], [0, 0, 1, 1], [], []>} : vector<8x16xf32>, vector<16x128xf32>, vector<8x128xf32> -> vector<8x128xf32>
    %c0_3 = arith.constant 0 : index
    %c0_4 = arith.constant 0 : index
    %3 = vector.load %arg2[%c0_3, %c0_4] : memref<1x128xf32, #tpu.memory_space<vmem>>, vector<1x128xf32>
    %4 = vector.broadcast %3 : vector<1x128xf32> to vector<8x128xf32>
    %5 = arith.addf %2, %4 : vector<8x128xf32>
    %cst_5 = arith.constant 0.000000e+00 : f32
    %6 = vector.broadcast %cst_5 : f32 to vector<8x128xf32>
    %7 = arith.maximumf %5, %6 : vector<8x128xf32>
    %c0_6 = arith.constant 0 : index
    %c0_7 = arith.constant 0 : index
    %8 = vector.load %arg3[%c0_6, %c0_7] : memref<128x128xf32, #tpu.memory_space<vmem>>, vector<128x128xf32>
    %cst_8 = arith.constant dense<0.000000e+00> : vector<8x128xf32>
    %9 = tpu.matmul %7, %8, %cst_8 {dimension_numbers = #tpu.dot_dimension_numbers<[1], [0], [0], [1], [0, 0, 1, 1], [], []>} : vector<8x128xf32>, vector<128x128xf32>, vector<8x128xf32> -> vector<8x128xf32>
    %c0_9 = arith.constant 0 : index
    %c0_10 = arith.constant 0 : index
    %10 = vector.load %arg4[%c0_9, %c0_10] : memref<1x128xf32, #tpu.memory_space<vmem>>, vector<1x128xf32>
    %11 = vector.broadcast %10 : vector<1x128xf32> to vector<8x128xf32>
    %12 = arith.addf %9, %11 : vector<8x128xf32>
    %13 = arith.negf %12 : vector<8x128xf32>
    %14 = math.exp %13 : vector<8x128xf32>
    %cst_11 = arith.constant 1.000000e+00 : f32
    %15 = vector.broadcast %cst_11 : f32 to vector<8x128xf32>
    %16 = arith.addf %15, %14 : vector<8x128xf32>
    %17 = arith.divf %15, %16 : vector<8x128xf32>
    %18 = arith.addf %17, %7 : vector<8x128xf32>
    %c0_12 = arith.constant 0 : index
    %c0_13 = arith.constant 0 : index
    %19 = vector.load %arg5[%c0_12, %c0_13] : memref<128x128xf32, #tpu.memory_space<vmem>>, vector<128x128xf32>
    %cst_14 = arith.constant dense<0.000000e+00> : vector<8x128xf32>
    %20 = tpu.matmul %18, %19, %cst_14 {dimension_numbers = #tpu.dot_dimension_numbers<[1], [0], [0], [1], [0, 0, 1, 1], [], []>} : vector<8x128xf32>, vector<128x128xf32>, vector<8x128xf32> -> vector<8x128xf32>
    %c0_15 = arith.constant 0 : index
    %c0_16 = arith.constant 0 : index
    %21 = vector.load %arg6[%c0_15, %c0_16] : memref<1x128xf32, #tpu.memory_space<vmem>>, vector<1x128xf32>
    %22 = vector.broadcast %21 : vector<1x128xf32> to vector<8x128xf32>
    %23 = arith.addf %20, %22 : vector<8x128xf32>
    %24 = arith.negf %23 : vector<8x128xf32>
    %25 = math.exp %24 : vector<8x128xf32>
    %cst_17 = arith.constant 1.000000e+00 : f32
    %26 = vector.broadcast %cst_17 : f32 to vector<8x128xf32>
    %27 = arith.addf %26, %25 : vector<8x128xf32>
    %28 = arith.divf %26, %27 : vector<8x128xf32>
    %c0_18 = arith.constant 0 : index
    %c0_19 = arith.constant 0 : index
    %29 = vector.load %arg7[%c0_18, %c0_19] : memref<128x8xf32, #tpu.memory_space<vmem>>, vector<128x8xf32>
    %cst_20 = arith.constant dense<0.000000e+00> : vector<8x8xf32>
    %30 = tpu.matmul %28, %29, %cst_20 {dimension_numbers = #tpu.dot_dimension_numbers<[1], [0], [0], [1], [0, 0, 1, 1], [], []>} : vector<8x128xf32>, vector<128x8xf32>, vector<8x8xf32> -> vector<8x8xf32>
    %c0_21 = arith.constant 0 : index
    %c0_22 = arith.constant 0 : index
    %31 = vector.load %arg8[%c0_21, %c0_22] : memref<1x8xf32, #tpu.memory_space<vmem>>, vector<1x8xf32>
    %32 = vector.broadcast %31 : vector<1x8xf32> to vector<8x8xf32>
    %33 = arith.addf %30, %32 : vector<8x8xf32>
    %c0_23 = arith.constant 0 : index
    %c0_24 = arith.constant 0 : index
    %34 = vector.load %arg9[%c0_23, %c0_24] : memref<8x8xf32, #tpu.memory_space<vmem>>, vector<8x8xf32>
    tpu.vector_store %arg9[%c0_23, %c0_24], %33 {strides = array<i32>} : memref<8x8xf32, #tpu.memory_space<vmem>>, vector<8x8xf32>,
    return
  }
}

</mosaic_0001>

<bundles_post_ra>
// kernel: tpu_custom_call.1
= control target key start
LH: loop header
LB: loop body
LE: loop exit
PB: predicated region body
PF: predicated region fallthrough
CT: control target
= control target key end

     0   :  { %14 = vsyncpa [#allocation3], 0  ;;  %s1034_s0 = inlined_call_operand.hbm [shape: f32[8,16], index: 0, kind: input, shape index: {}]   ;;  %s1035_s1 = inlined_call_operand.vmem [shape: f32[16,128], index: 1, kind: input, shape index: {}]   ;;  %s1036_s2 = inlined_call_operand.vmem [shape: f32[1,128], index: 2, kind: input, shape index: {}]   ;;  %s1037_s3 = inlined_call_operand.vmem [shape: f32[128,128], index: 3, kind: input, shape index: {}]   ;;  %s1038_s4 = inlined_call_operand.vmem [shape: f32[1,128], index: 4, kind: input, shape index: {}]   ;;  %s1039_s5 = inlined_call_operand.hbm [shape: f32[128,128], index: 5, kind: input, shape index: {}]   ;;  %s1040_s6 = inlined_call_operand.vmem [shape: f32[1,128], index: 6, kind: input, shape index: {}]   ;;  %s1041_s7 = inlined_call_operand.vmem [shape: f32[128,8], index: 7, kind: input, shape index: {}]   ;;  %s1042_s8 = inlined_call_operand.vmem [shape: f32[1,8], index: 8, kind: input, shape index: {}]   ;;  %s1043_s9 = inlined_call_operand.hbm [shape: f32[8,8], index: 9, kind: output, shape index: {}]  }
   0x1   :  { %15 = vsyncpa [#allocation6], 0 }
   0x2   :  { %16 = vsyncpa [#allocation4], 0  ;;  %s790_s30 = smov [#allocation2]   ;;  %s791_s11 = smov [#allocation5]  }
   0x3   :  { %s23_s10 = sshll.u32 %s790_s30, 4  ;;  %s40_s12 = sshll.u32 %s791_s11, 4  ;;  %s24_s10 = int_to_ptr.vmem [resolvable:$true] %s23_s10  ;;  %s848_s12 = int_to_ptr.vmem [resolvable:$true] %s40_s12 }
   0x4   :  { %s718_s15 = scalar_lea.hbm %s1034_s0, 128 }
   0x5   :  { %p719_p0 = scmp.ne.s32.totalorder %s1034_s0, %s718_s15  ;;  %p722_p1 = scmp.lt.u32.totalorder %s718_s15, %s1034_s0 }
   0x7   :  { %p724_p2 = pnand %p722_p1, %p719_p0 }
   0x9   :  { %727 = shalt.err (!%p724_p2)
}
   0xa   :  { %s728_s20 = scalar_lea.vmem %s24_s10, 128  ;;  %p733_p4 = scmp.lt.s32.totalorder %s24_s10, %s24_s10 }
   0xb   :  { %p729_p3 = scmp.ne.s32.totalorder %s24_s10, %s728_s20  ;;  %p734_p5 = scmp.lt.s32.totalorder %s728_s20, %s728_s20 }
   0xd   :  { %p735_p6 = por %p734_p5, %p733_p4 }
   0xf   :  { %p736_p7 = pnand %p735_p6, %p729_p3 }
  0x11   :  { %739 = shalt.err (!%p736_p7)
}
  0x12   :  { %26 = dma.hbm_to_vmem [thread:$0]  %s1034_s0, 128, %s24_s10, [#allocation3]  }
  0x13   :  { %s740_s25 = scalar_lea.hbm %s1039_s5, 2048 }
  0x14   :  { %p741_p8 = scmp.ne.s32.totalorder %s1039_s5, %s740_s25  ;;  %p744_p9 = scmp.lt.u32.totalorder %s740_s25, %s1039_s5 }
  0x16   :  { %p746_p10 = pnand %p744_p9, %p741_p8 }
  0x18   :  { %749 = shalt.err (!%p746_p10)
}
  0x19   :  { %s750_s30 = scalar_lea.vmem %s848_s12, 2048  ;;  %p755_p12 = scmp.lt.s32.totalorder %s848_s12, %s848_s12 }
  0x1a   :  { %p751_p11 = scmp.ne.s32.totalorder %s848_s12, %s750_s30  ;;  %p756_p13 = scmp.lt.s32.totalorder %s750_s30, %s750_s30 }
  0x1c   :  { %p757_p0 = por %p756_p13, %p755_p12 }
  0x1e   :  { %p758_p1 = pnand %p757_p0, %p751_p11 }
  0x20   :  { %761 = shalt.err (!%p758_p1)
}
  0x21   :  { %s792_s0 = smov 128   ;;  %s793_s10 = smov 8  }
  0x22   :  { %46 = dma.hbm_to_vmem [thread:$0]  %s1039_s5, 2048, %s848_s12, [#allocation6], %s792_s0, %s792_s0, %s793_s10  }
  0x23   :  { %784 = dma.done.wait [#allocation3], 128  }
  0x24   :  { %785 = vsyncadd [#allocation3], 4294967168 }
  0x25   :  { %786 = dma.done.wait [#allocation6], 2048  }
  0x26   :  { %787 = vsyncadd [#allocation6], 4294965248  ;;  %v794_v0 = vmov 0.0|0.0   ;;  %vm795_vm0 = vmmov 0   ;;  %v796_v1 = vmov 0.0   ;;  %v60_v2 = vld [vmem:[%s1035_s1] sm:$0xff] }
  0x27   :  { %627 = vmatprep.subr.bf16.mxu0 %v794_v0  ;;  %519 = vmatprep.mubr.msk.f32.mxu0 %vm795_vm0, %v796_v1  ;;  %v61_v3 = vld [vmem:[%s1035_s1 + $0x8] sm:$0xff]  ;;  %v144_v5 = vld [vmem:[%s1037_s3] sm:$0xff]  ;;  %v146_v7 = vld [vmem:[%s1037_s3 + $0x10] sm:$0xff]  ;;  %vm69_vm1 = vcmask 130048   ;;  %vm436_vm2 = vcmask 64512  }
  0x28   :  { %630 = vmatprep.subr.bf16.mxu1 %v794_v0  ;;  %554 = vmatprep.mubr.msk.f32.mxu1 %vm795_vm0, %v796_v1  ;;  %v628_v4 = vpack.c.bf16 %v61_v3, %v60_v2  ;;  %v145_v6 = vld [vmem:[%s1037_s3 + $0x8] sm:$0xff]  ;;  %v147_v9 = vld [vmem:[%s1037_s3 + $0x18] sm:$0xff]  ;;  %v59_v10 = vld [vmem:[#allocation2] sm:$0xff] }
  0x29   :  { %v631_v8 = vpack.c.bf16 %v145_v6, %v144_v5  ;;  %v634_v11 = vpack.c.bf16 %v147_v9, %v146_v7  ;;  %v148_v12 = vld [vmem:[%s1037_s3 + $0x20] sm:$0xff]  ;;  %v149_v13 = vld [vmem:[%s1037_s3 + $0x28] sm:$0xff]  ;;  %v150_v15 = vld [vmem:[%s1037_s3 + $0x30] sm:$0xff] }
  0x2a   :  { %629 = vmatpush3.bf16.msra.mxu0 %v628_v4  ;;  %v637_v14 = vpack.c.bf16 %v149_v13, %v148_v12  ;;  %v151_v16 = vld [vmem:[%s1037_s3 + $0x38] sm:$0xff]  ;;  %v152_v18 = vld [vmem:[%s1037_s3 + $0x40] sm:$0xff]  ;;  %v153_v19 = vld [vmem:[%s1037_s3 + $0x48] sm:$0xff] }
  0x2b   :  { %632 = vmatpush3.bf16.msra.mxu1 %v631_v8  ;;  %654 = vmatprep.subr.bf16.mxu0 %v794_v0  ;;  %v640_v17 = vpack.c.bf16 %v151_v16, %v150_v15  ;;  %v643_v20 = vpack.c.bf16 %v153_v19, %v152_v18  ;;  %v154_v21 = vld [vmem:[%s1037_s3 + $0x50] sm:$0xff]  ;;  %v155_v22 = vld [vmem:[%s1037_s3 + $0x58] sm:$0xff]  ;;  %v156_v24 = vld [vmem:[%s1037_s3 + $0x60] sm:$0xff] }
  0x2c   :  { %633 = vmatprep.subr.bf16.mxu1 %v794_v0  ;;  %v646_v23 = vpack.c.bf16 %v155_v22, %v154_v21  ;;  %v157_v25 = vld [vmem:[%s1037_s3 + $0x68] sm:$0xff]  ;;  %v158_v27 = vld [vmem:[%s1037_s3 + $0x70] sm:$0xff]  ;;  %v159_v28 = vld [vmem:[%s1037_s3 + $0x78] sm:$0xff] }
  0x2d   :  { %520 = vmatmul.mubr.msk.f32.vlgmr.msra.gmra.mrb[0].mxu0 %vm69_vm1, %v59_v10  ;;  %v649_v26 = vpack.c.bf16 %v157_v25, %v156_v24  ;;  %v652_v29 = vpack.c.bf16 %v159_v28, %v158_v27  ;;  %v454_v30 = vld [vmem:[%s1036_s2] ss:$0 sm:$0xff]  ;;  %v244_v35 = vld [vmem:[#allocation5] sm:$0xff]  ;;  %v245_v36 = vld [vmem:[#allocation5 + $0x8] sm:$0xff] }
  0x2e   :  { %589 = vmatprep.mubr.msk.f32.mxu0 %vm795_vm0, %v796_v1  ;;  %v655_v37 = vpack.c.bf16 %v245_v36, %v244_v35  ;;  %v246_v38 = vld [vmem:[#allocation5 + $0x10] sm:$0xff]  ;;  %v247_v39 = vld [vmem:[#allocation5 + $0x18] sm:$0xff]  ;;  %v248_v41 = vld [vmem:[#allocation5 + $0x20] sm:$0xff] }
  0x2f   :  { %635 = vmatpush3.bf16.msra.mxu1 %v634_v11  ;;  %v658_v40 = vpack.c.bf16 %v247_v39, %v246_v38  ;;  %v249_v42 = vld [vmem:[#allocation5 + $0x28] sm:$0xff]  ;;  %v250_v44 = vld [vmem:[#allocation5 + $0x30] sm:$0xff]  ;;  %v251_v45 = vld [vmem:[#allocation5 + $0x38] sm:$0xff] }
  0x30   :  { %636 = vmatprep.subr.bf16.mxu1 %v794_v0  ;;  %656 = vmatpush3.bf16.msra.mxu0 %v655_v37  ;;  %v661_v43 = vpack.c.bf16 %v249_v42, %v248_v41  ;;  %v664_v46 = vpack.c.bf16 %v251_v45, %v250_v44  ;;  %v252_v47 = vld [vmem:[#allocation5 + $0x40] sm:$0xff]  ;;  %v253_v48 = vld [vmem:[#allocation5 + $0x48] sm:$0xff]  ;;  %v254_v50 = vld [vmem:[#allocation5 + $0x50] sm:$0xff] }
  0x31   :  { %657 = vmatprep.subr.bf16.mxu0 %v794_v0  ;;  %v667_v49 = vpack.c.bf16 %v253_v48, %v252_v47  ;;  %v255_v51 = vld [vmem:[#allocation5 + $0x58] sm:$0xff]  ;;  %v256_v53 = vld [vmem:[#allocation5 + $0x60] sm:$0xff]  ;;  %v257_v54 = vld [vmem:[#allocation5 + $0x68] sm:$0xff] }
  0x32   :  { %v670_v52 = vpack.c.bf16 %v255_v51, %v254_v50  ;;  %v673_v55 = vpack.c.bf16 %v257_v54, %v256_v53  ;;  %v258_v56 = vld [vmem:[#allocation5 + $0x70] sm:$0xff]  ;;  %v259_v57 = vld [vmem:[#allocation5 + $0x78] sm:$0xff]  ;;  %v344_v60 = vld [vmem:[%s1041_s7 + $0x8] sm:$0xff] }
  0x33   :  { %638 = vmatpush3.bf16.msra.mxu1 %v637_v14  ;;  %v676_v58 = vpack.c.bf16 %v259_v57, %v258_v56  ;;  %v343_v59 = vld [vmem:[%s1041_s7] sm:$0xff]  ;;  %v345_v8 = vld [vmem:[%s1041_s7 + $0x10] sm:$0xff]  ;;  %v346_v9 = vld [vmem:[%s1041_s7 + $0x18] sm:$0xff] }
  0x34   :  { %639 = vmatprep.subr.bf16.mxu1 %v794_v0  ;;  %659 = vmatpush3.bf16.msra.mxu0 %v658_v40  ;;  %v679_v61 = vpack.c.bf16 %v344_v60, %v343_v59  ;;  %v456_v62 = vld [vmem:[%s1038_s4] ss:$0 sm:$0xff]  ;;  %v682_v10 = vpack.c.bf16 %v346_v9, %v345_v8  ;;  %v348_v12 = vld [vmem:[%s1041_s7 + $0x28] sm:$0xff]  ;;  %v349_v14 = vld [vmem:[%s1041_s7 + $0x30] sm:$0xff]  ;;  %s797_s4 = smov [#allocation7]  }
  0x35   :  { %660 = vmatprep.subr.bf16.mxu0 %v794_v0  ;;  %v347_v11 = vld [vmem:[%s1041_s7 + $0x20] sm:$0xff]  ;;  %v350_v15 = vld [vmem:[%s1041_s7 + $0x38] sm:$0xff]  ;;  %v352_v18 = vld [vmem:[%s1041_s7 + $0x48] sm:$0xff]  ;;  %s444_s11 = sshll.u32 %s797_s4, 4  ;;  %s445_s11 = int_to_ptr.vmem [resolvable:$true] %s444_s11 }
  0x36   :  { %v685_v13 = vpack.c.bf16 %v348_v12, %v347_v11  ;;  %v688_v16 = vpack.c.bf16 %v350_v15, %v349_v14  ;;  %v354_v21 = vld [vmem:[%s1041_s7 + $0x58] sm:$0xff]  ;;  %v356_v24 = vld [vmem:[%s1041_s7 + $0x68] sm:$0xff]  ;;  %v460_v37 = vld [vmem:[%s1042_s8] ss:$0 sm:$0xff]  ;;  %p767_p3 = scmp.lt.s32.totalorder %s445_s11, %s445_s11 }
  0x37   :  { %641 = vmatpush3.bf16.msra.mxu1 %v640_v17  ;;  %v351_v17 = vld [vmem:[%s1041_s7 + $0x40] sm:$0xff]  ;;  %v358_v27 = vld [vmem:[%s1041_s7 + $0x78] sm:$0xff] }
  0x38   :  { %642 = vmatprep.subr.bf16.mxu1 %v794_v0  ;;  %662 = vmatpush3.bf16.msra.mxu0 %v661_v43  ;;  %v691_v19 = vpack.c.bf16 %v352_v18, %v351_v17 }
  0x39   :  { %663 = vmatprep.subr.bf16.mxu0 %v794_v0 }
  0x3b   :  { %644 = vmatpush3.bf16.msra.mxu1 %v643_v20  ;;  %v353_v20 = vld [vmem:[%s1041_s7 + $0x50] sm:$0xff] }
  0x3c   :  { %645 = vmatprep.subr.bf16.mxu1 %v794_v0  ;;  %665 = vmatpush3.bf16.msra.mxu0 %v664_v46  ;;  %v694_v22 = vpack.c.bf16 %v354_v21, %v353_v20 }
  0x3d   :  { %666 = vmatprep.subr.bf16.mxu0 %v794_v0 }
  0x3f   :  { %647 = vmatpush3.bf16.msra.mxu1 %v646_v23  ;;  %v355_v23 = vld [vmem:[%s1041_s7 + $0x60] sm:$0xff] }
  0x40   :  { %648 = vmatprep.subr.bf16.mxu1 %v794_v0  ;;  %668 = vmatpush3.bf16.msra.mxu0 %v667_v49  ;;  %v697_v25 = vpack.c.bf16 %v356_v24, %v355_v23 }
  0x41   :  { %669 = vmatprep.subr.bf16.mxu0 %v794_v0 }
  0x43   :  { %650 = vmatpush3.bf16.msra.mxu1 %v649_v26  ;;  %v357_v26 = vld [vmem:[%s1041_s7 + $0x70] sm:$0xff] }
  0x44   :  { %651 = vmatprep.subr.bf16.mxu1 %v794_v0  ;;  %671 = vmatpush3.bf16.msra.mxu0 %v670_v52  ;;  %v700_v28 = vpack.c.bf16 %v358_v27, %v357_v26 }
  0x45   :  { %672 = vmatprep.subr.bf16.mxu0 %v794_v0 }
  0x47   :  { %653 = vmatpush3.bf16.msra.mxu1 %v652_v29  ;;  %v458_v29 = vld [vmem:[%s1040_s6] ss:$0 sm:$0xff]  ;;  %s762_s6 = scalar_lea.vmem %s445_s11, 128 }
  0x48   :  { %678 = vmatprep.subr.bf16.mxu1 %v794_v0  ;;  %674 = vmatpush3.bf16.msra.mxu0 %v673_v55  ;;  %p763_p2 = scmp.ne.s32.totalorder %s445_s11, %s762_s6  ;;  %p768_p4 = scmp.lt.s32.totalorder %s762_s6, %s762_s6 }
  0x49   :  { %675 = vmatprep.subr.bf16.mxu0 %v794_v0 }
  0x4a   :  { %p769_p5 = por %p768_p4, %p767_p3 }
  0x4c   :  { %677 = vmatpush3.bf16.msra.mxu0 %v676_v58  ;;  %p770_p6 = pnand %p769_p5, %p763_p2 }
 0x100   :  { %v139_v31 = vpop.f32.mrb[0].mxu0 }
 0x101   :  { %v140_v32 = vadd.f32 %v454_v30, %v139_v31  ;;  %v521_v33 = vpop.f32.mrb[1].mxu0 }
 0x103   :  { %v143_v34 = vmax.f32 %v140_v32, 0.0 }
 0x105   :  { %555 = vmatmul.mubr.f32.vlgmr.msra.gmra.mrb[0].mxu1 %v143_v34 }
 0x106   :  { %624 = vmatprep.mubr.msk.f32.mxu1 %vm795_vm0, %v796_v1  ;;  %680 = vmatpush3.bf16.msra.mxu1 %v679_v61 }
 0x107   :  { %681 = vmatprep.subr.bf16.mxu1 %v794_v0 }
 0x10a   :  { %683 = vmatpush3.bf16.msra.mxu1 %v682_v10 }
 0x10b   :  { %684 = vmatprep.subr.bf16.mxu1 %v794_v0 }
 0x10e   :  { %686 = vmatpush3.bf16.msra.mxu1 %v685_v13 }
 0x10f   :  { %687 = vmatprep.subr.bf16.mxu1 %v794_v0 }
 0x112   :  { %689 = vmatpush3.bf16.msra.mxu1 %v688_v16 }
 0x113   :  { %690 = vmatprep.subr.bf16.mxu1 %v794_v0 }
 0x116   :  { %692 = vmatpush3.bf16.msra.mxu1 %v691_v19 }
 0x117   :  { %693 = vmatprep.subr.bf16.mxu1 %v794_v0 }
 0x11a   :  { %695 = vmatpush3.bf16.msra.mxu1 %v694_v22 }
 0x11b   :  { %696 = vmatprep.subr.bf16.mxu1 %v794_v0 }
 0x11e   :  { %698 = vmatpush3.bf16.msra.mxu1 %v697_v25 }
 0x11f   :  { %699 = vmatprep.subr.bf16.mxu1 %v794_v0 }
 0x122   :  { %701 = vmatpush3.bf16.msra.mxu1 %v700_v28 }
 0x1d8   :  { %v233_v63 = vpop.f32.mrb[0].mxu1 }
 0x1d9   :  { %v234_v1 = vadd.f32 %v456_v62, %v233_v63  ;;  %v556_v2 = vpop.f32.mrb[1].mxu1 }
 0x1db   :  { %v457_v3 = vmul.f32 -1.442695, %v234_v1 }
 0x1dd   :  { %710 = vpow2.f32 %v457_v3 }
 0x1e7   :  { %v711_v4 = vpop.eup %710 }
 0x1e8   :  { %v240_v5 = vadd.f32 1.0, %v711_v4 }
 0x1ea   :  { %712 = vrcp.f32 %v240_v5 }
 0x1f4   :  { %v713_v6 = vpop.eup %712 }
 0x1f5   :  { %v243_v7 = vadd.f32 %v713_v6, %v143_v34 }
 0x1f7   :  { %590 = vmatmul.mubr.f32.vlgmr.msra.gmra.mrb[2].mxu0 %v243_v7 }
 0x2ca   :  { %v333_v30 = vpop.f32.mrb[2].mxu0 }
 0x2cb   :  { %v334_v31 = vadd.f32 %v458_v29, %v333_v30  ;;  %v591_v32 = vpop.f32.mrb[3].mxu0 }
 0x2cd   :  { %v459_v33 = vmul.f32 -1.442695, %v334_v31 }
 0x2cf   :  { %714 = vpow2.f32 %v459_v33 }
 0x2d9   :  { %v715_v34 = vpop.eup %714 }
 0x2da   :  { %v340_v35 = vadd.f32 1.0, %v715_v34 }
 0x2dc   :  { %716 = vrcp.f32 %v340_v35 }
 0x2e6   :  { %v717_v36 = vpop.eup %716 }
 0x2e7   :  { %625 = vmatmul.mubr.f32.vlgmr.msra.gmra.mrb[2].mxu1 %v717_v36 }
 0x3ba   :  { %v432_v0 = vpop.f32.mrb[2].mxu1 }
 0x3bb   :  { %v433_v38 = vadd.f32 %v460_v37, %v432_v0  ;;  %v626_v39 = vpop.f32.mrb[3].mxu1 }
 0x3bd   :  { %437 = vst.msk [vmem:[#allocation7] sm:$0xff] %vm436_vm2, %v433_v38 }
 0x3be   :  { %773 = shalt.err (!%p770_p6)
}
 0x3bf   :  { %s774_s15 = scalar_lea.hbm %s1043_s9, 128 }
 0x3c0   :  { %p775_p7 = scmp.ne.s32.totalorder %s1043_s9, %s774_s15  ;;  %p778_p8 = scmp.lt.u32.totalorder %s774_s15, %s1043_s9 }
 0x3c2   :  { %p780_p9 = pnand %p778_p8, %p775_p7 }
 0x3c4   :  { %783 = shalt.err (!%p780_p9)
}
 0x3c5   :  { %447 = dma.vmem_to_hbm [thread:$0]  %s445_s11, 128, %s1043_s9, [#allocation4]  }
 0x3c6   :  { %788 = dma.done.wait [#allocation4], 128  }
 0x3c7   :  { %789 = vsyncadd [#allocation4], 4294967168 }
 0x3c8   :  { %451 = vsyncpa [#allocation3], 1 }
 0x3c9   :  { %452 = vsyncpa [#allocation6], 1 }
 0x3ca   :  { %453 = vsyncpa [#allocation4], 1 }

</bundles_post_ra>
